<compile_context>
chip_gen: v7x
topology: tpu7x:2x2x1
jax: 0.10.0
libtpu: 0.0.40
codegen_flags: <defaults>
</compile_context>

<pallas_src>
import functools

import jax
import jax.numpy as jnp
from jax.experimental import pallas as pl
from jax.experimental.pallas import tpu as pltpu


# ----------------------------------------------------------------------------
# Pallas kernels: K-tiled matmul + bias (+ residual / fused downsample) (+ ReLU)
# f32 accumulation in VMEM scratch; grid = (row_tiles, k_tiles)
# ----------------------------------------------------------------------------
def _mm_bias_kernel(x_ref, w_ref, bias_ref, o_ref, acc_ref, *, apply_relu):
    """out = act( sum_k(x_k @ w_k) + bias )."""
    @pl.when(pl.program_id(1) == 0)
    def _():
        acc_ref[...] = jnp.zeros_like(acc_ref)

    acc_ref[...] += jnp.dot(x_ref[...], w_ref[...],
                            preferred_element_type=jnp.float32)

    @pl.when(pl.program_id(1) == pl.num_programs(1) - 1)
    def _():
        out = acc_ref[...] + bias_ref[...]
        if apply_relu:
            out = jnp.maximum(out, 0.0)
        o_ref[...] = out.astype(o_ref.dtype)


def _mm_bias_add_relu_kernel(x_ref, w_ref, bias_ref, res_ref, o_ref, acc_ref):
    """out = relu( sum_k(x_k @ w_k) + bias + residual )   (identity shortcut)."""
    @pl.when(pl.program_id(1) == 0)
    def _():
        acc_ref[...] = jnp.zeros_like(acc_ref)

    acc_ref[...] += jnp.dot(x_ref[...], w_ref[...],
                            preferred_element_type=jnp.float32)

    @pl.when(pl.program_id(1) == pl.num_programs(1) - 1)
    def _():
        out = acc_ref[...] + bias_ref[...] + res_ref[...]
        o_ref[...] = jnp.maximum(out, 0.0).astype(o_ref.dtype)


def _mm_bias_ds_add_relu_kernel(x_ref, w_ref, bias_ref, xs_ref, wd_ref,
                                dbias_ref, o_ref, acc_ref):
    """out = relu( sum_k(x_k @ w_k) + bias + (xs @ wd + dbias) ).

    The projection (downsample) shortcut matmul is computed once, at the last
    K step, directly in-kernel: the residual tensor never touches HBM.
    """
    @pl.when(pl.program_id(1) == 0)
    def _():
        acc_ref[...] = jnp.zeros_like(acc_ref)

    acc_ref[...] += jnp.dot(x_ref[...], w_ref[...],
                            preferred_element_type=jnp.float32)

    @pl.when(pl.program_id(1) == pl.num_programs(1) - 1)
    def _():
        res = jnp.dot(xs_ref[...], wd_ref[...],
                      preferred_element_type=jnp.float32) + dbias_ref[...]
        out = acc_ref[...] + bias_ref[...] + res
        o_ref[...] = jnp.maximum(out, 0.0).astype(o_ref.dtype)


# ----------------------------------------------------------------------------
# Tiling helpers
# ----------------------------------------------------------------------------
def _round_up(x, m):
    return ((x + m - 1) // m) * m


def _choose_tiles(M, K):
    """Pick (tm, m_pad, tk, k_pad).

    Row tile targets 256 (good MXU fill / DMA amortization on v6e/v7x, still
    fine on v5e), but is halved while the grid would have <2 row tiles so the
    'parallel' axis can be split across v7x's two TensorCores.
    K tile is a multiple of 128 (lane dim of the LHS block), capped at 512 so
    weight blocks stay small in VMEM.
    """
    m8 = _round_up(M, 8)
    tm = 256
    while tm > 8 and pl.cdiv(m8, tm) < 2:
        tm //= 2
    m_pad = _round_up(M, tm)

    k_pad = _round_up(K, 128)
    tk = 128
    for cand in (512, 256):
        if k_pad % cand == 0:
            tk = cand
            break
    return tm, m_pad, tk, k_pad


# ----------------------------------------------------------------------------
# Fused conv-as-matmul + folded BN (+ residual / downsample) (+ ReLU)
# ----------------------------------------------------------------------------
def _fused_matmul_bn(x2d, w2d, scale, shift, *, apply_relu,
                     residual=None, ds=None, out_dtype=jnp.float32):
    """act( (x @ (w*scale)) + shift [+ residual | + xs@(wd*ds_scale)+ds_shift] ).

    BN scales are folded into weight columns in the wrapper; kernels only apply
    per-channel biases. Operands are cast to bf16 for the native MXU path;
    accumulation / bias / residual math stays f32.
    """
    assert residual is None or ds is None
    M, K = x2d.shape
    N = w2d.shape[1]

    tm, m_pad, tk, k_pad = _choose_tiles(M, K)
    n_pad = _round_up(N, 128)  # lane-dense output slab (unmasked vst)

    # Fold BN scale into the weights in f32, then cast to bf16.
    w_f = w2d.astype(jnp.float32) * scale.astype(jnp.float32)[None, :]
    x_p = jnp.pad(x2d, ((0, m_pad - M), (0, k_pad - K))).astype(jnp.bfloat16)
    w_p = jnp.pad(w_f, ((0, k_pad - K), (0, n_pad - N))).astype(jnp.bfloat16)
    b_p = jnp.pad(shift.astype(jnp.float32), (0, n_pad - N)).reshape(1, n_pad)

    grid = (m_pad // tm, k_pad // tk)

    in_specs = [
        pl.BlockSpec((tm, tk), lambda i, k: (i, k)),        # activations
        pl.BlockSpec((tk, n_pad), lambda i, k: (k, 0)),     # folded weights
        pl.BlockSpec((1, n_pad), lambda i, k: (0, 0)),      # bias (BN shift)
    ]
    args = [x_p, w_p, b_p]
    extra_flops = 0
    extra_bytes = 0

    if residual is not None:
        # Identity shortcut: stream the residual tile (f32) and add at finalize.
        r_p = jnp.pad(residual.astype(jnp.float32),
                      ((0, m_pad - M), (0, n_pad - N)))
        in_specs.append(pl.BlockSpec((tm, n_pad), lambda i, k: (i, 0)))
        args.append(r_p)
        kernel = _mm_bias_add_relu_kernel
        extra_bytes = m_pad * n_pad * 4
    elif ds is not None:
        # Projection shortcut fused into the same kernel.
        xs2d, wd2d, d_scale, d_shift = ds
        Kd = xs2d.shape[1]
        kd_pad = _round_up(Kd, 128)
        wd_f = wd2d.astype(jnp.float32) * d_scale.astype(jnp.float32)[None, :]
        xs_p = jnp.pad(xs2d, ((0, m_pad - M), (0, kd_pad - Kd))).astype(jnp.bfloat16)
        wd_p = jnp.pad(wd_f, ((0, kd_pad - Kd), (0, n_pad - N))).astype(jnp.bfloat16)
        db_p = jnp.pad(d_shift.astype(jnp.float32), (0, n_pad - N)).reshape(1, n_pad)
        in_specs += [
            pl.BlockSpec((tm, kd_pad), lambda i, k: (i, 0)),
            pl.BlockSpec((kd_pad, n_pad), lambda i, k: (0, 0)),
            pl.BlockSpec((1, n_pad), lambda i, k: (0, 0)),
        ]
        args += [xs_p, wd_p, db_p]
        kernel = _mm_bias_ds_add_relu_kernel
        extra_flops = 2 * m_pad * kd_pad * n_pad
        extra_bytes = m_pad * kd_pad * 2 + kd_pad * n_pad * 2 + n_pad * 4
    else:
        kernel = functools.partial(_mm_bias_kernel, apply_relu=apply_relu)

    out_itemsize = jnp.dtype(out_dtype).itemsize
    bytes_accessed = (m_pad * k_pad * 2 + k_pad * n_pad * 2 + n_pad * 4
                      + m_pad * n_pad * out_itemsize + extra_bytes)
    cost = pl.CostEstimate(flops=2 * m_pad * k_pad * n_pad + extra_flops,
                           transcendentals=0,
                           bytes_accessed=bytes_accessed)

    out = pl.pallas_call(
        kernel,
        out_shape=jax.ShapeDtypeStruct((m_pad, n_pad), out_dtype),
        grid=grid,
        in_specs=in_specs,
        out_specs=pl.BlockSpec((tm, n_pad), lambda i, k: (i, 0)),
        scratch_shapes=[pltpu.VMEM((tm, n_pad), jnp.float32)],
        compiler_params=pltpu.CompilerParams(
            dimension_semantics=("parallel", "arbitrary"),
            vmem_limit_bytes=64 * 1024 * 1024,
        ),
        cost_estimate=cost,
    )(*args)
    return out[:M, :N]


# ----------------------------------------------------------------------------
# Glue: layout, im2col, BN folding, parameter construction
# ----------------------------------------------------------------------------
def _fold_bn(gamma, beta, running_mean, running_var, eps=1e-5):
    scale = gamma / jnp.sqrt(running_var + eps)
    shift = beta - running_mean * scale
    return scale, shift


def _im2col_3x3(x_nhwc, stride):
    """x: (N,H,W,C) -> patches (N*Ho*Wo, 9*C) with padding=1, kernel=3.

    Runs on the bf16 activations coming out of the conv1 kernel, so the 9x
    patches tensor is half the previous HBM footprint.
    """
    # TODO(synk): an in-kernel 9-tap shifted accumulation would avoid the 9x
    # patches round trip entirely.
    n, h, w, c = x_nhwc.shape
    xp = jnp.pad(x_nhwc, ((0, 0), (1, 1), (1, 1), (0, 0)))
    ho = (h + 2 - 3) // stride + 1
    wo = (w + 2 - 3) // stride + 1
    cols = []
    for kh in range(3):
        for kw in range(3):
            cols.append(
                xp[:, kh:kh + (ho - 1) * stride + 1:stride,
                      kw:kw + (wo - 1) * stride + 1:stride, :]
            )
    patches = jnp.stack(cols, axis=3)          # (N, Ho, Wo, 9, C)
    return patches.reshape(n * ho * wo, 9 * c), (n, ho, wo)


def init_bottleneck_params(key, inplanes, planes, stride=1, downsample=False):
    expansion = 4
    ks = jax.random.split(key, 16)
    p = {}

    def conv_w(k, shape):  # PyTorch layout (Cout, Cin, kh, kw)
        return jax.random.normal(k, shape, jnp.float32) * 0.1

    def bn(k0, k1, k2, k3, c):
        return dict(
            gamma=1.0 + 0.1 * jax.random.normal(k0, (c,), jnp.float32),
            beta=0.1 * jax.random.normal(k1, (c,), jnp.float32),
            mean=0.1 * jax.random.normal(k2, (c,), jnp.float32),
            var=0.5 + jax.random.uniform(k3, (c,), jnp.float32),
        )

    p["conv1_w"] = conv_w(ks[0], (planes, inplanes, 1, 1))
    p["bn1"] = bn(ks[1], ks[2], ks[3], ks[4], planes)
    p["conv2_w"] = conv_w(ks[5], (planes, planes, 3, 3))
    p["bn2"] = bn(ks[6], ks[7], ks[8], ks[9], planes)
    p["conv3_w"] = conv_w(ks[10], (planes * expansion, planes, 1, 1))
    p["bn3"] = bn(ks[11], ks[12], ks[13], ks[14], planes * expansion)
    if downsample:
        ks2 = jax.random.split(ks[15], 5)
        p["ds_conv_w"] = conv_w(ks2[0], (planes * expansion, inplanes, 1, 1))
        p["ds_bn"] = bn(ks2[1], ks2[2], ks2[3], ks2[4], planes * expansion)
    p["stride"] = stride
    p["downsample"] = downsample
    return p


def bottleneck_forward(params, x_nchw):
    """Forward pass of the Bottleneck block. Input/output layout: NCHW (f32)."""
    stride = params["stride"]
    # TODO(synk): the NCHW<->NHWC transposes at the boundary are an extra HBM
    # round trip of the activations; callers that can supply NHWC should skip.
    x = jnp.transpose(x_nchw, (0, 2, 3, 1))       # NCHW -> NHWC
    n, h, w, cin = x.shape

    # ---- conv1 (1x1) + bn1 + relu ----
    w1 = params["conv1_w"][:, :, 0, 0].T          # (Cin, planes)
    s1, b1 = _fold_bn(params["bn1"]["gamma"], params["bn1"]["beta"],
                      params["bn1"]["mean"], params["bn1"]["var"])
    out = _fused_matmul_bn(x.reshape(n * h * w, cin), w1, s1, b1,
                           apply_relu=True, out_dtype=jnp.bfloat16)
    planes = w1.shape[1]
    out = out.reshape(n, h, w, planes)

    # ---- conv2 (3x3, stride, pad=1) + bn2 + relu ----
    patches, (_, ho, wo) = _im2col_3x3(out, stride)
    w2 = jnp.transpose(params["conv2_w"], (2, 3, 1, 0)).reshape(9 * planes, planes)
    s2, b2 = _fold_bn(params["bn2"]["gamma"], params["bn2"]["beta"],
                      params["bn2"]["mean"], params["bn2"]["var"])
    out = _fused_matmul_bn(patches, w2, s2, b2, apply_relu=True,
                           out_dtype=jnp.bfloat16)
    out = out.reshape(n * ho * wo, planes)

    # ---- conv3 (1x1) + bn3 + shortcut + relu (all fused in one kernel) ----
    w3 = params["conv3_w"][:, :, 0, 0].T          # (planes, planes*4)
    s3, b3 = _fold_bn(params["bn3"]["gamma"], params["bn3"]["beta"],
                      params["bn3"]["mean"], params["bn3"]["var"])

    if params["downsample"]:
        xs = x[:, ::stride, ::stride, :].reshape(n * ho * wo, cin)
        wd = params["ds_conv_w"][:, :, 0, 0].T    # (Cin, planes*4)
        sd, bd = _fold_bn(params["ds_bn"]["gamma"], params["ds_bn"]["beta"],
                          params["ds_bn"]["mean"], params["ds_bn"]["var"])
        out = _fused_matmul_bn(out, w3, s3, b3, apply_relu=False,
                               ds=(xs, wd, sd, bd))
    else:
        if stride != 1 or cin != planes * 4:
            raise ValueError(
                "identity shortcut requires stride == 1 and inplanes == "
                f"planes*4, got stride={stride}, inplanes={cin}, planes={planes}")
        residual = x.reshape(n * h * w, cin)
        out = _fused_matmul_bn(out, w3, s3, b3, apply_relu=False,
                               residual=residual)

    out = out.reshape(n, ho, wo, w3.shape[1])
    return jnp.transpose(out, (0, 3, 1, 2))       # NHWC -> NCHW


# ----------------------------------------------------------------------------
# Pure-JAX reference (eval-mode BN) for a sanity check
# ----------------------------------------------------------------------------
def _ref_forward(params, x_nchw):
    def conv(x, w, stride, pad):
        return jax.lax.conv_general_dilated(
            x, w, window_strides=(stride, stride), padding=[(pad, pad)] * 2,
            dimension_numbers=("NCHW", "OIHW", "NCHW"),
            precision=jax.lax.Precision.HIGHEST)

    def bn(x, b):
        s = b["gamma"] / jnp.sqrt(b["var"] + 1e-5)
        return x * s[None, :, None, None] + (b["beta"] - b["mean"] * s)[None, :, None, None]

    stride = params["stride"]
    out = jax.nn.relu(bn(conv(x_nchw, params["conv1_w"], 1, 0), params["bn1"]))
    out = jax.nn.relu(bn(conv(out, params["conv2_w"], stride, 1), params["bn2"]))
    out = bn(conv(out, params["conv3_w"], 1, 0), params["bn3"])
    if params["downsample"]:
        residual = bn(conv(x_nchw, params["ds_conv_w"], stride, 0), params["ds_bn"])
    else:
        residual = x_nchw
    return jax.nn.relu(out + residual)


# ----------------------------------------------------------------------------
if __name__ == "__main__":
    key = jax.random.PRNGKey(0)

    configs = [
        # (N, inplanes, H, W, planes, stride, downsample)
        (2, 8, 16, 16, 4, 1, True),     # projection shortcut, stride 1
        (2, 8, 16, 16, 4, 2, True),     # projection shortcut, stride 2
        (2, 16, 16, 16, 4, 1, False),   # identity shortcut (inplanes == planes*4)
    ]

    for idx, (N, inplanes, H, W, planes, stride, downsample) in enumerate(configs):
        k_x, k_p = jax.random.split(jax.random.fold_in(key, idx))
        x = jax.random.normal(k_x, (N, inplanes, H, W), jnp.float32)
        params = init_bottleneck_params(k_p, inplanes, planes, stride, downsample)

        out = jax.block_until_ready(bottleneck_forward(params, x))
        ref = jax.block_until_ready(_ref_forward(params, x))

        ho = (H + 2 - 3) // stride + 1
        assert out.shape == ref.shape == (N, planes * 4, ho, ho), (out.shape, ref.shape)
        err = float(jnp.max(jnp.abs(out - ref)))
        # bf16 operands with f32 accumulation -> slightly looser tolerance.
        assert err < 5e-2, err

    print("KERNEL_OK")
</pallas_src>

<mosaic_0001>
module attributes {stable_mosaic.version = 11 : i64} {
  func.func @_mm_bias_kernel(%arg0: i32, %arg1: i32, %arg2: memref<256x128xbf16, #tpu.memory_space<vmem>>, %arg3: memref<128x128xbf16, #tpu.memory_space<vmem>>, %arg4: memref<1x128xf32, #tpu.memory_space<vmem>>, %arg5: memref<256x128xbf16, #tpu.memory_space<vmem>>, %arg6: memref<256x128xf32, #tpu.memory_space<vmem>>) attributes {dimension_semantics = [#tpu.dimension_semantics<parallel>, #tpu.dimension_semantics<arbitrary>], iteration_bounds = array<i64: 2, 1>, scalar_prefetch = 0 : i64, scratch_operands = 1 : i64, tpu.core_type = #tpu.core_type<tc>, window_params = [{transform_indices = @transform_0, window_bounds = array<i64: 256, 128>}, {transform_indices = @transform_1, window_bounds = array<i64: 128, 128>}, {pipeline_mode = #tpu.pipeline_mode<synchronous>, transform_indices = @transform_2, window_bounds = array<i64: 1, 128>}, {transform_indices = @transform_3, window_bounds = array<i64: 256, 128>}]} {
    %c0_i32 = arith.constant 0 : i32
    %0 = arith.cmpi eq, %arg1, %c0_i32 : i32
    %1 = arith.extui %0 : i1 to i32
    %c0_i32_0 = arith.constant 0 : i32
    %2 = arith.cmpi ne, %1, %c0_i32_0 : i32
    scf.if %2 {
      %cst_10 = arith.constant 0.000000e+00 : f32
      %12 = vector.broadcast %cst_10 : f32 to vector<256x128xf32>
      %c0_11 = arith.constant 0 : index
      %c0_12 = arith.constant 0 : index
      %13 = vector.load %arg6[%c0_11, %c0_12] : memref<256x128xf32, #tpu.memory_space<vmem>>, vector<256x128xf32>
      tpu.vector_store %arg6[%c0_11, %c0_12], %12 {strides = array<i32>} : memref<256x128xf32, #tpu.memory_space<vmem>>, vector<256x128xf32>,
    } else {
    }
    %c0 = arith.constant 0 : index
    %c0_1 = arith.constant 0 : index
    %3 = vector.load %arg6[%c0, %c0_1] : memref<256x128xf32, #tpu.memory_space<vmem>>, vector<256x128xf32>
    %c0_2 = arith.constant 0 : index
    %c0_3 = arith.constant 0 : index
    %4 = vector.load %arg2[%c0_2, %c0_3] : memref<256x128xbf16, #tpu.memory_space<vmem>>, vector<256x128xbf16>
    %c0_4 = arith.constant 0 : index
    %c0_5 = arith.constant 0 : index
    %5 = vector.load %arg3[%c0_4, %c0_5] : memref<128x128xbf16, #tpu.memory_space<vmem>>, vector<128x128xbf16>
    %cst = arith.constant dense<0.000000e+00> : vector<256x128xf32>
    %6 = tpu.matmul %4, %5, %cst {dimension_numbers = #tpu.dot_dimension_numbers<[1], [0], [0], [1], [0, 0, 1, 1], [], []>} : vector<256x128xbf16>, vector<128x128xbf16>, vector<256x128xf32> -> vector<256x128xf32>
    %7 = arith.addf %3, %6 : vector<256x128xf32>
    %c0_6 = arith.constant 0 : index
    %c0_7 = arith.constant 0 : index
    %8 = vector.load %arg6[%c0_6, %c0_7] : memref<256x128xf32, #tpu.memory_space<vmem>>, vector<256x128xf32>
    tpu.vector_store %arg6[%c0_6, %c0_7], %7 {strides = array<i32>} : memref<256x128xf32, #tpu.memory_space<vmem>>, vector<256x128xf32>,
    %c0_i32_8 = arith.constant 0 : i32
    %9 = arith.cmpi eq, %arg1, %c0_i32_8 : i32
    %10 = arith.extui %9 : i1 to i32
    %c0_i32_9 = arith.constant 0 : i32
    %11 = arith.cmpi ne, %10, %c0_i32_9 : i32
    scf.if %11 {
      %c0_10 = arith.constant 0 : index
      %c0_11 = arith.constant 0 : index
      %12 = vector.load %arg6[%c0_10, %c0_11] : memref<256x128xf32, #tpu.memory_space<vmem>>, vector<256x128xf32>
      %c0_12 = arith.constant 0 : index
      %c0_13 = arith.constant 0 : index
      %13 = vector.load %arg4[%c0_12, %c0_13] : memref<1x128xf32, #tpu.memory_space<vmem>>, vector<1x128xf32>
      %14 = vector.broadcast %13 : vector<1x128xf32> to vector<256x128xf32>
      %15 = arith.addf %12, %14 : vector<256x128xf32>
      %cst_14 = arith.constant 0.000000e+00 : f32
      %16 = vector.broadcast %cst_14 : f32 to vector<256x128xf32>
      %17 = arith.maximumf %15, %16 : vector<256x128xf32>
      %18 = arith.truncf %17 : vector<256x128xf32> to vector<256x128xbf16>
      %c0_15 = arith.constant 0 : index
      %c0_16 = arith.constant 0 : index
      %19 = vector.load %arg5[%c0_15, %c0_16] : memref<256x128xbf16, #tpu.memory_space<vmem>>, vector<256x128xbf16>
      tpu.vector_store %arg5[%c0_15, %c0_16], %18 {strides = array<i32>} : memref<256x128xbf16, #tpu.memory_space<vmem>>, vector<256x128xbf16>,
    } else {
    }
    return
  }
  func.func @transform_0(%arg0: i32, %arg1: i32) -> (i32, i32) {
    %c0_i32 = arith.constant 0 : i32
    return %arg0, %arg1 : i32, i32
  }
  func.func @transform_1(%arg0: i32, %arg1: i32) -> (i32, i32) {
    %c0_i32 = arith.constant 0 : i32
    %c0_i32_0 = arith.constant 0 : i32
    return %arg1, %c0_i32 : i32, i32
  }
  func.func @transform_2(%arg0: i32, %arg1: i32) -> (i32, i32) {
    %c0_i32 = arith.constant 0 : i32
    %c0_i32_0 = arith.constant 0 : i32
    %c0_i32_1 = arith.constant 0 : i32
    return %c0_i32, %c0_i32_0 : i32, i32
  }
  func.func @transform_3(%arg0: i32, %arg1: i32) -> (i32, i32) {
    %c0_i32 = arith.constant 0 : i32
    %c0_i32_0 = arith.constant 0 : i32
    return %arg0, %c0_i32 : i32, i32
  }
}

</mosaic_0001>

<bundles_post_ra>
// kernel: tpu_custom_call.1
= control target key start
LH: loop header
LB: loop body
LE: loop exit
PB: predicated region body
PF: predicated region fallthrough
CT: control target
= control target key end

     0   :  { %8 = vsyncpa [#allocation4], 0  ;;  %s2055_s0 = inlined_call_operand.hbm [shape: bf16[512,128], index: 0, kind: input, shape index: {}]   ;;  %s2056_s1 = inlined_call_operand.hbm [shape: bf16[128,128], index: 1, kind: input, shape index: {}]   ;;  %s2057_s2 = inlined_call_operand.hbm [shape: f32[1,128], index: 2, kind: input, shape index: {}]   ;;  %s2058_s3 = inlined_call_operand.hbm [shape: bf16[512,128], index: 3, kind: output, shape index: {}]  }
   0x1   :  { %10 = vsyncpa [#allocation4 + $0x1], 0 }
   0x2   :  { %11 = vsyncpa [#allocation7], 0 }
   0x3   :  { %12 = vsyncpa [#allocation5], 0 }
   0x4   :  { %14 = vsyncpa [#allocation5 + $0x1], 0  ;;  %s1718_s12 = smov 0   ;;  %s1720_s13 = smov 0  }
   0x5   :  { %s1722_s14 = smov 0   ;;  %s1724_s15 = smov 0  }
   0x6   :  { %s1726_s16 = smov 0   ;;  %s1728_s17 = smov 0  }
   0x7 LB: > { %s1112_s18 = sadd.s32 4294967295, %s1688_s17   ;;  %s1113_s19 = sadd.s32 4294967294, %s1688_s17   ;;  %s1688_s17 = sphi %s1728_s17, %s20_s17   ;;  %s1684_s16 = sphi %s1726_s16, %s2080_s16   ;;  %s1680_s15 = sphi %s1724_s15, %s2079_s15   ;;  %s1676_s14 = sphi %s1722_s14, %s2078_s14   ;;  %s1672_s13 = sphi %s1720_s13, %s2077_s13   ;;  %s1668_s12 = sphi %s1718_s12, %s2076_s12  }
   0x8   : > { %p54_p0 = scmp.ne.s32.totalorder %s1672_s13, %s1668_s12  ;;  %p1752_p1 = scmp.eq.s32.totalorder %s1112_s18, 0 }
   0x9   : > { %p1756_p2 = scmp.eq.s32.totalorder %s1112_s18, 1  ;;  %p131_p3 = scmp.eq.s32.totalorder %s1113_s19, 1 }
   0xa   : > { %s2063_s20 = scalar_select %p1752_p1, 1, 0 }
   0xb   : > { %p1762_p4 = por %p1752_p1, %p54_p0  ;;  %p1114_p5 = scmp.ge.s32.totalorder %s1688_s17, 1 }
   0xc   : > { %p1767_p6 = por %p131_p3, %p54_p0  ;;  %p138_p7 = scmp.lt.s32.totalorder %s1688_s17, 3 }
   0xd   : > { %s2065_s22 = scalar_select %p1762_p4, 1, 0 }
   0xe   : > { %s2066_s23 = scalar_select %p1767_p6, 1, 0 }
   0xf   : > { %p1772_p8 = pnand %p1114_p5, %p138_p7  ;;  %s1690_s25 = smov [#allocation6]  }
  0x10   : > { %s153_s26 = sshll.u32 %s1690_s25, 4  ;;  %s1691_s28 = smov [#allocation8]   ;;  %s1776_s26 = int_to_ptr.vmem [resolvable:$true] %s153_s26 }
  0x11   : > { %p1417_p9 = pneg %p1772_p8  ;;  %s167_s29 = sshll.u32 %s1691_s28, 4  ;;  %s1787_s29 = int_to_ptr.vmem [resolvable:$true] %s167_s29 }
  0x12   : > { %s1516_s5 = scalar_lea.hbm %s2056_s1, 1024 }
  0x13   : > { %p1783_p11 = pnand %p1417_p9, %p1752_p1  ;;  %p1517_p12 = scmp.ne.s32.totalorder %s2056_s1, %s1516_s5 }
  0x14   : > { %p1523_p5 = scmp.lt.u32.totalorder %s1516_s5, %s2056_s1 }
  0x15   : > { %p1518_p13 = pneg %p1783_p11 }
  0x17   : > { %p1519_p0 = pnand %p1518_p13, %p1517_p12 }
  0x19   : > { %p1520_p3 = pneg %p1519_p0 }
  0x1b   : > { %p1525_p7 = pnand %p1523_p5, %p1520_p3 }
  0x1d   : > { %1528 = shalt.err (!%p1525_p7)
}
  0x1e   : > { %s1529_s10 = scalar_lea.vmem %s1776_s26, 1024  ;;  %p1537_p1 = scmp.lt.s32.totalorder %s1776_s26, %s1776_s26 }
  0x1f   : > { %p1530_p9 = scmp.ne.s32.totalorder %s1776_s26, %s1529_s10  ;;  %p1538_p12 = scmp.lt.s32.totalorder %s1529_s10, %s1529_s10 }
  0x21   : > { %p1532_p10 = pnand %p1530_p9, %p1518_p13  ;;  %p1539_p0 = por %p1538_p12, %p1537_p1 }
  0x23   : > { %p1533_p6 = pneg %p1532_p10 }
  0x25   : > { %p1540_p4 = pnand %p1539_p0, %p1533_p6 }
  0x27   : > { %1543 = shalt.err (!%p1540_p4)
}
  0x28   : > { %s1692_s11 = smov 64   ;;  %s1693_s18 = smov 4  }
  0x29   : > { %1420 = dma.hbm_to_vmem [thread:$0]  (!%p1783_p11), %s2056_s1, 1024, %s1776_s26, [#allocation7], %s1692_s11, %s1692_s11, %s1693_s18  }
  0x2a   : > { %s1544_s4 = scalar_lea.hbm %s2057_s2, 16 }
  0x2b   : > { %p1545_p1 = scmp.ne.s32.totalorder %s2057_s2, %s1544_s4  ;;  %p1551_p10 = scmp.lt.u32.totalorder %s1544_s4, %s2057_s2 }
  0x2d   : > { %p1547_p4 = pnand %p1545_p1, %p1518_p13 }
  0x2f   : > { %p1548_p6 = pneg %p1547_p4 }
  0x31   : > { %p1553_p3 = pnand %p1551_p10, %p1548_p6 }
  0x33   : > { %1556 = shalt.err (!%p1553_p3)
}
  0x34   : > { %s1557_s26 = scalar_lea.vmem %s1787_s29, 16  ;;  %s1564_s9 = scalar_lea.vmem %s1787_s29, 32 }
  0x35   : > { %p1558_p5 = scmp.ne.s32.totalorder %s1787_s29, %s1557_s26  ;;  %p1565_p12 = scmp.lt.s32.totalorder %s1787_s29, %s1787_s29 }
  0x36   : > { %p1566_p0 = scmp.lt.s32.totalorder %s1564_s9, %s1557_s26 }
  0x37   : > { %p1560_p7 = pnand %p1558_p5, %p1518_p13 }
  0x38   : > { %p1567_p1 = por %p1566_p0, %p1565_p12 }
  0x39   : > { %p1561_p9 = pneg %p1560_p7 }
  0x3b   : > { %p1568_p4 = pnand %p1567_p1, %p1561_p9 }
  0x3d   : > { %1571 = shalt.err (!%p1568_p4)
}
  0x3e   : > { %1423 = dma.hbm_to_vmem [thread:$0]  (!%p1783_p11), %s2057_s2, 16, %s1787_s29, [#allocation7]  }
  0x3f   : > { %s32_s25 = sadd.s32 1, %s1684_s16  ;;  %s41_s28 = sadd.s32 1, %s1676_s14 }
  0x40   : > { %p34_p13 = scmp.ge.s32.totalorder %s32_s25, 2  ;;  %p48_p6 = scmp.ne.s32.totalorder %s1676_s14, %s1672_s13 }
  0x41   : > { %p49_p10 = scmp.eq.s32.totalorder %s1688_s17, 0  ;;  %p1434_p3 = scmp.lt.s32.totalorder %s1688_s17, 2 }
  0x42   : > { %s2082_s25 = smov (%p34_p13, %s32_s25), 0  ;;  %p1855_p7 = por %p1756_p2, %p48_p6 }
  0x43   : > { %p50_p5 = por %p49_p10, %p48_p6  ;;  %s36_s30 = ssub.s32 %s1684_s16, %s2082_s25 }
  0x44   : > { %s2069_s27 = scalar_select %p1855_p7, 1, 0 }
  0x45   : > { %s178_s4 = sand.u32 1, %s1676_s14   ;;  %p39_p9 = scmp.eq.s32.totalorder %s36_s30, 0 }
  0x46   : > { %s1118_s29 = sshll.u32 %s178_s4, 7  ;;  %s1188_s5 = sshll.u32 %s1684_s16, 11 }
  0x47   : > { %s1864_s6 = scalar_select %p39_p9, %s1676_s14, %s41_s28  }
  0x48   : > { %s1869_s26 = scalar_lea.hbm %s2055_s0, %s1188_s5  ;;  %s182_s21 = scalar_lea.vmem [#allocation3], %s1118_s29 }
  0x49   : > { %s190_s9 = sshll.u32 %s182_s21, 4  ;;  %p1873_p2 = pnand %p1434_p3, %p50_p5  ;;  %s1877_s9 = int_to_ptr.vmem [resolvable:$true] %s190_s9 }
  0x4a   : > { %s1879_s19 = scalar_lea.sflag [#allocation4], %s178_s4  ;;  %s1572_s28 = scalar_lea.hbm %s1869_s26, 2048 }
  0x4b   : > { %p1573_p11 = scmp.ne.s32.totalorder %s1869_s26, %s1572_s28  ;;  %p1574_p12 = pneg %p1873_p2 }
  0x4c   : > { %s1577_s5 = scalar_lea.hbm %s2055_s0, 4096  ;;  %p1578_p4 = scmp.lt.u32.totalorder %s1869_s26, %s2055_s0 }
  0x4d   : > { %p1575_p0 = pnand %p1574_p12, %p1573_p11  ;;  %p1579_p13 = scmp.lt.u32.totalorder %s1577_s5, %s1572_s28 }
  0x4e   : > { %p1581_p10 = scmp.lt.u32.totalorder %s1572_s28, %s1869_s26 }
  0x4f   : > { %p1576_p1 = pneg %p1575_p0  ;;  %p1580_p6 = por %p1579_p13, %p1578_p4 }
  0x51   : > { %p1582_p3 = por %p1581_p10, %p1580_p6 }
  0x53   : > { %p1583_p5 = pnand %p1582_p3, %p1576_p1 }
  0x55   : > { %1586 = shalt.err (!%p1583_p5)
}
  0x56   : > { %s1587_s4 = scalar_lea.vmem %s1877_s9, 2048  ;;  %s1694_s21 = smov [#allocation3]  }
  0x57   : > { %p1588_p9 = scmp.ne.s32.totalorder %s1877_s9, %s1587_s4  ;;  %s1592_s30 = sshll.u32 %s1694_s21, 4  ;;  %s1593_s30 = int_to_ptr.vmem [resolvable:$false] %s1592_s30 }
  0x58   : > { %s1594_s29 = scalar_lea.vmem %s1593_s30, 4096  ;;  %p1595_p7 = scmp.lt.s32.totalorder %s1877_s9, %s1593_s30 }
  0x59   : > { %p1590_p11 = pnand %p1588_p9, %p1574_p12  ;;  %p1596_p4 = scmp.lt.s32.totalorder %s1594_s29, %s1587_s4 }
  0x5b   : > { %p1591_p0 = pneg %p1590_p11  ;;  %p1597_p13 = por %p1596_p4, %p1595_p7 }
  0x5d   : > { %p1598_p6 = pnand %p1597_p13, %p1591_p0 }
  0x5f   : > { %1601 = shalt.err (!%p1598_p6)
}
  0x60   : > { %1427 = dma.hbm_to_vmem [thread:$0]  (!%p1873_p2), %s1869_s26, 2048, %s1877_s9, %s1879_s19, %s1692_s11, %s1692_s11, %s1693_s18  }
  0x61   : > { %202 = sbr.rel (%p1772_p8) target bundleno = 401 (0x191), region = 32  ;;  %s1913_s28 = sand.u32 (!%p1772_p8), 1, %s1672_s13  }
  0x62   : > { %s1122_s5 = sshll.u32 (!%p1772_p8), %s1913_s28, 7  ;;  %s205_s7 = scalar_lea.sflag (!%p1772_p8), [#allocation4], %s1913_s28 }
  0x63   : > { %s1919_s10 = scalar_lea.vmem (!%p1772_p8), [#allocation3], %s1122_s5  ;;  %p2071_p7 = scmp.ne.s32.totalorder (!%p1772_p8), %s2065_s22, 0 }
  0x68   : > { %1655 = dma.done.wait (%p2071_p7), %s205_s7, 2048  }
  0x69   : > { %1657 = vsyncadd (%p2071_p7), %s205_s7, 4294965248  ;;  %p2072_p2 = scmp.ne.s32.totalorder %s2063_s20, 0 }
  0x6b   : > { %1659 = dma.done.wait (%p2072_p2), [#allocation7], 1040  }
  0x6c   : > { %1661 = vsyncadd (%p2072_p2), [#allocation7], 4294966256  ;;  %v1492_v0 = vld [vmem:[#allocation6] sm:$0xff]   ;;  %v1493_v1 = vld [vmem:[#allocation6 + $0x8] sm:$0xff]   ;;  %s1957_s20 = scalar_lea.vmem [#allocation9], %s1122_s5  ;;  %s1221_s22 = sshll.u32 %s1680_s15, 11 }
  0x6d   : > { %1341 = vmatprep.subr.bf16.mxu0 %v1492_v0  ;;  %1389 = vmatprep.subr.bf16.mxu1 %v1492_v0  ;;  %v1494_v2 = vld [vmem:[#allocation6 + $0x10] sm:$0xff]   ;;  %v1495_v3 = vld [vmem:[#allocation6 + $0x18] sm:$0xff]   ;;  %v1500_v4 = vld [vmem:[%s1919_s10] sm:$0xff]   ;;  %s1008_s24 = sshll.u32 %s1957_s20, 4  ;;  %s2000_s15 = scalar_lea.hbm %s2058_s3, %s1221_s22  ;;  %s2002_s24 = int_to_ptr.vmem [resolvable:$true] %s1008_s24 }
  0x6e   : > { %1342 = vmatpush3.bf16.msra.mxu0 %v1492_v0  ;;  %1397 = vmatpush3.bf16.msra.mxu1 %v1492_v0  ;;  %v1501_v5 = vld [vmem:[%s1919_s10 + $0x40] sm:$0xff]   ;;  %v1497_v7 = vld [vmem:[#allocation6 + $0x28] sm:$0xff]   ;;  %v1498_v8 = vld [vmem:[#allocation6 + $0x30] sm:$0xff]   ;;  %s995_s26 = scalar_lea.sflag [#allocation5], %s1913_s28  ;;  %s1602_s9 = scalar_lea.vmem %s2002_s24, 2048 }
  0x6f   : > { %1343 = vmatprep.subr.bf16.mxu0 %v1493_v1  ;;  %1390 = vmatprep.subr.bf16.mxu1 %v1493_v1  ;;  %v1496_v6 = vld [vmem:[#allocation6 + $0x20] sm:$0xff]   ;;  %v1499_v9 = vld [vmem:[#allocation6 + $0x38] sm:$0xff]   ;;  %v1502_v10 = vld [vmem:[%s1919_s10 + $0x8] sm:$0xff]   ;;  %p1603_p8 = scmp.ne.s32.totalorder %s2002_s24, %s1602_s9  ;;  %p2073_p12 = scmp.ne.s32.totalorder %s2069_s27, 0 }
  0x70   : > { %1357 = vmatprep.mubr.bf16.mxu0 %v1500_v4  ;;  %1373 = vmatprep.mubr.bf16.mxu1 %v1501_v5  ;;  %v1503_v11 = vld [vmem:[%s1919_s10 + $0x48] sm:$0xff]   ;;  %v1504_v12 = vld [vmem:[%s1919_s10 + $0x10] sm:$0xff]   ;;  %v1506_v14 = vld [vmem:[%s1919_s10 + $0x18] sm:$0xff]   ;;  %s1695_s19 = smov [#allocation9]  }
  0x71   : > { %v1505_v13 = vld [vmem:[%s1919_s10 + $0x50] sm:$0xff]   ;;  %v1507_v15 = vld [vmem:[%s1919_s10 + $0x58] sm:$0xff]   ;;  %v1508_v16 = vld [vmem:[%s1919_s10 + $0x20] sm:$0xff]   ;;  %p1604_p1 = pnand %p1603_p8, %p2073_p12  ;;  %s1606_s8 = sshll.u32 %s1695_s19, 4  ;;  %s1607_s8 = int_to_ptr.vmem [resolvable:$false] %s1606_s8 }
  0x72   : > { %1344 = vmatpush3.bf16.msra.mxu0 %v1493_v1  ;;  %1398 = vmatpush3.bf16.msra.mxu1 %v1493_v1  ;;  %v1509_v17 = vld [vmem:[%s1919_s10 + $0x60] sm:$0xff]   ;;  %v1510_v18 = vld [vmem:[%s1919_s10 + $0x28] sm:$0xff]   ;;  %v1512_v20 = vld [vmem:[%s1919_s10 + $0x30] sm:$0xff]   ;;  %s1608_s4 = scalar_lea.vmem %s1607_s8, 4096  ;;  %p1609_p3 = scmp.lt.s32.totalorder %s2002_s24, %s1607_s8 }
  0x73   : > { %1345 = vmatprep.subr.bf16.mxu0 %v1494_v2  ;;  %1391 = vmatprep.subr.bf16.mxu1 %v1494_v2  ;;  %v1511_v19 = vld [vmem:[%s1919_s10 + $0x68] sm:$0xff]   ;;  %v1513_v21 = vld [vmem:[%s1919_s10 + $0x70] sm:$0xff]   ;;  %v1514_v22 = vld [vmem:[%s1919_s10 + $0x38] sm:$0xff]   ;;  %p1605_p10 = pneg %p1604_p1  ;;  %p1610_p5 = scmp.lt.s32.totalorder %s1608_s4, %s1602_s9 }
  0x74   : > { %v1515_v23 = vld [vmem:[%s1919_s10 + $0x78] sm:$0xff]   ;;  %v1945_v24 = vld [vmem:[#allocation8] ss:$0 sm:$0xff] }
  0x75   : > { %p1611_p9 = por %p1610_p5, %p1609_p3 }
  0x76   : > { %1346 = vmatpush3.bf16.msra.mxu0 %v1494_v2  ;;  %1399 = vmatpush3.bf16.msra.mxu1 %v1494_v2 }
  0x77   : > { %1347 = vmatprep.subr.bf16.mxu0 %v1495_v3  ;;  %1392 = vmatprep.subr.bf16.mxu1 %v1495_v3  ;;  %p1612_p11 = pnand %p1611_p9, %p1605_p10 }
  0x7a   : > { %1348 = vmatpush3.bf16.msra.mxu0 %v1495_v3  ;;  %1400 = vmatpush3.bf16.msra.mxu1 %v1495_v3 }
  0x7b   : > { %1349 = vmatprep.subr.bf16.mxu0 %v1496_v6  ;;  %1393 = vmatprep.subr.bf16.mxu1 %v1496_v6 }
  0x7e   : > { %1350 = vmatpush3.bf16.msra.mxu0 %v1496_v6  ;;  %1401 = vmatpush3.bf16.msra.mxu1 %v1496_v6 }
  0x7f   : > { %1351 = vmatprep.subr.bf16.mxu0 %v1497_v7  ;;  %1394 = vmatprep.subr.bf16.mxu1 %v1497_v7 }
  0x82   : > { %1352 = vmatpush3.bf16.msra.mxu0 %v1497_v7  ;;  %1402 = vmatpush3.bf16.msra.mxu1 %v1497_v7 }
  0x83   : > { %1353 = vmatprep.subr.bf16.mxu0 %v1498_v8  ;;  %1395 = vmatprep.subr.bf16.mxu1 %v1498_v8 }
  0x86   : > { %1354 = vmatpush3.bf16.msra.mxu0 %v1498_v8  ;;  %1403 = vmatpush3.bf16.msra.mxu1 %v1498_v8 }
  0x87   : > { %1355 = vmatprep.subr.bf16.mxu0 %v1499_v9  ;;  %1396 = vmatprep.subr.bf16.mxu1 %v1499_v9 }
  0x8a   : > { %1356 = vmatpush3.bf16.msra.mxu0 %v1499_v9  ;;  %1404 = vmatpush3.bf16.msra.mxu1 %v1499_v9 }
  0x8d   : > { %1358 = vmatmul.mubr.bf16.vlgmr.msra.gmra.mrb[0].mxu0 %v1502_v10  ;;  %1374 = vmatmul.mubr.bf16.vlgmr.msra.gmra.mrb[0].mxu1 %v1503_v11 }
  0x8e   : > { %1361 = vmatprep.mubr.bf16.mxu0 %v1504_v12  ;;  %1377 = vmatprep.mubr.bf16.mxu1 %v1505_v13 }
  0x95   : > { %1362 = vmatmul.mubr.bf16.gmra.mrb[4].mxu0 %v1506_v14  ;;  %1378 = vmatmul.mubr.bf16.gmra.mrb[4].mxu1 %v1507_v15 }
  0x96   : > { %1365 = vmatprep.mubr.bf16.mxu0 %v1508_v16  ;;  %1381 = vmatprep.mubr.bf16.mxu1 %v1509_v17 }
  0x9d   : > { %1366 = vmatmul.mubr.bf16.gmra.mrb[8].mxu0 %v1510_v18  ;;  %1382 = vmatmul.mubr.bf16.gmra.mrb[8].mxu1 %v1511_v19 }
  0x9e   : > { %1369 = vmatprep.mubr.bf16.mxu0 %v1512_v20  ;;  %1385 = vmatprep.mubr.bf16.mxu1 %v1513_v21 }
  0xa5   : > { %1370 = vmatmul.mubr.bf16.gmra.mrb[12].mxu0 %v1514_v22  ;;  %1386 = vmatmul.mubr.bf16.gmra.mrb[12].mxu1 %v1515_v23 }
 0x160   : > { %v1359_v25 = vpop.f32.mrb[0].mxu0  ;;  %v1375_v26 = vpop.f32.mrb[0].mxu1 }
 0x161   : > { %v772_v27 = vadd.f32 %v1359_v25, %v1945_v24  ;;  %v788_v28 = vadd.f32 %v1375_v26, %v1945_v24  ;;  %v537_v29 = vpop.f32.mrb[1].mxu0  ;;  %v601_v30 = vpop.f32.mrb[1].mxu1 }
 0x162   : > { %v770_v31 = vadd.f32 %v1945_v24, %v537_v29  ;;  %v786_v32 = vadd.f32 %v1945_v24, %v601_v30  ;;  %v1360_v33 = vpop.f32.mrb[2].mxu0  ;;  %v1376_v34 = vpop.f32.mrb[2].mxu1 }
 0x163   : > { %v773_v35 = vadd.f32 %v1360_v33, %v1945_v24  ;;  %v789_v36 = vadd.f32 %v1376_v34, %v1945_v24  ;;  %v540_v37 = vpop.f32.mrb[3].mxu0  ;;  %v604_v38 = vpop.f32.mrb[3].mxu1  ;;  %v804_v41 = vmax.f32 %v772_v27, 0.0  ;;  %v820_v42 = vmax.f32 %v788_v28, 0.0 }
 0x164   : > { %v771_v39 = vadd.f32 %v1945_v24, %v540_v37  ;;  %v787_v40 = vadd.f32 %v1945_v24, %v604_v38  ;;  %v802_v45 = vmax.f32 %v770_v31, 0.0  ;;  %v818_v46 = vmax.f32 %v786_v32, 0.0 }
 0x165   : > { %v805_v43 = vmax.f32 %v773_v35, 0.0  ;;  %v821_v44 = vmax.f32 %v789_v36, 0.0 }
 0x166   : > { %v803_v47 = vmax.f32 %v771_v39, 0.0  ;;  %v819_v48 = vmax.f32 %v787_v40, 0.0 }
 0x167   : > { %v1230_v49 = vpack.c.bf16 %v805_v43, %v804_v41  ;;  %v1270_v50 = vpack.c.bf16 %v821_v44, %v820_v42 }
 0x168   : > { %v1225_v51 = vpack.c.bf16 %v803_v47, %v802_v45  ;;  %v1265_v52 = vpack.c.bf16 %v819_v48, %v818_v46  ;;  %v1363_v53 = vpop.f32.mrb[4].mxu0  ;;  %v1379_v54 = vpop.f32.mrb[4].mxu1 }
 0x169   : > { %1302 = vst [vmem:[%s1957_s20 + $0x8] sm:$0xff] %v1230_v49   ;;  %1310 = vst [vmem:[%s1957_s20 + $0x48] sm:$0xff] %v1270_v50   ;;  %v776_v55 = vadd.f32 %v1363_v53, %v1945_v24  ;;  %v792_v56 = vadd.f32 %v1379_v54, %v1945_v24  ;;  %v553_v57 = vpop.f32.mrb[5].mxu0  ;;  %v617_v58 = vpop.f32.mrb[5].mxu1 }
 0x16a   : > { %1226 = vst [vmem:[%s1957_s20] sm:$0xff] %v1225_v51   ;;  %1309 = vst [vmem:[%s1957_s20 + $0x40] sm:$0xff] %v1265_v52   ;;  %v774_v59 = vadd.f32 %v1945_v24, %v553_v57  ;;  %v790_v60 = vadd.f32 %v1945_v24, %v617_v58  ;;  %v1364_v61 = vpop.f32.mrb[6].mxu0  ;;  %v1380_v62 = vpop.f32.mrb[6].mxu1 }
 0x16b   : > { %v777_v63 = vadd.f32 %v1364_v61, %v1945_v24  ;;  %v793_v0 = vadd.f32 %v1380_v62, %v1945_v24  ;;  %v556_v1 = vpop.f32.mrb[7].mxu0  ;;  %v620_v2 = vpop.f32.mrb[7].mxu1  ;;  %v808_v5 = vmax.f32 %v776_v55, 0.0  ;;  %v824_v6 = vmax.f32 %v792_v56, 0.0 }
 0x16c   : > { %v775_v3 = vadd.f32 %v1945_v24, %v556_v1  ;;  %v791_v4 = vadd.f32 %v1945_v24, %v620_v2  ;;  %v806_v9 = vmax.f32 %v774_v59, 0.0  ;;  %v822_v10 = vmax.f32 %v790_v60, 0.0 }
 0x16d   : > { %v809_v7 = vmax.f32 %v777_v63, 0.0  ;;  %v825_v8 = vmax.f32 %v793_v0, 0.0 }
 0x16e   : > { %v807_v11 = vmax.f32 %v775_v3, 0.0  ;;  %v823_v12 = vmax.f32 %v791_v4, 0.0 }
 0x16f   : > { %v1240_v13 = vpack.c.bf16 %v809_v7, %v808_v5  ;;  %v1280_v14 = vpack.c.bf16 %v825_v8, %v824_v6 }
 0x170   : > { %v1235_v15 = vpack.c.bf16 %v807_v11, %v806_v9  ;;  %v1275_v16 = vpack.c.bf16 %v823_v12, %v822_v10  ;;  %v1367_v17 = vpop.f32.mrb[8].mxu0  ;;  %v1383_v18 = vpop.f32.mrb[8].mxu1 }
 0x171   : > { %1304 = vst [vmem:[%s1957_s20 + $0x18] sm:$0xff] %v1240_v13   ;;  %1312 = vst [vmem:[%s1957_s20 + $0x58] sm:$0xff] %v1280_v14   ;;  %v780_v19 = vadd.f32 %v1367_v17, %v1945_v24  ;;  %v796_v20 = vadd.f32 %v1383_v18, %v1945_v24  ;;  %v569_v21 = vpop.f32.mrb[9].mxu0  ;;  %v633_v22 = vpop.f32.mrb[9].mxu1 }
 0x172   : > { %1303 = vst [vmem:[%s1957_s20 + $0x10] sm:$0xff] %v1235_v15   ;;  %1311 = vst [vmem:[%s1957_s20 + $0x50] sm:$0xff] %v1275_v16   ;;  %v778_v23 = vadd.f32 %v1945_v24, %v569_v21  ;;  %v794_v25 = vadd.f32 %v1945_v24, %v633_v22  ;;  %v1368_v26 = vpop.f32.mrb[10].mxu0  ;;  %v1384_v27 = vpop.f32.mrb[10].mxu1 }
 0x173   : > { %v781_v28 = vadd.f32 %v1368_v26, %v1945_v24  ;;  %v797_v29 = vadd.f32 %v1384_v27, %v1945_v24  ;;  %v572_v30 = vpop.f32.mrb[11].mxu0  ;;  %v636_v31 = vpop.f32.mrb[11].mxu1  ;;  %v812_v34 = vmax.f32 %v780_v19, 0.0  ;;  %v828_v35 = vmax.f32 %v796_v20, 0.0 }
 0x174   : > { %v779_v32 = vadd.f32 %v1945_v24, %v572_v30  ;;  %v795_v33 = vadd.f32 %v1945_v24, %v636_v31  ;;  %v810_v38 = vmax.f32 %v778_v23, 0.0  ;;  %v826_v39 = vmax.f32 %v794_v25, 0.0 }
 0x175   : > { %v813_v36 = vmax.f32 %v781_v28, 0.0  ;;  %v829_v37 = vmax.f32 %v797_v29, 0.0 }
 0x176   : > { %v811_v40 = vmax.f32 %v779_v32, 0.0  ;;  %v827_v41 = vmax.f32 %v795_v33, 0.0 }
 0x177   : > { %v1250_v42 = vpack.c.bf16 %v813_v36, %v812_v34  ;;  %v1290_v43 = vpack.c.bf16 %v829_v37, %v828_v35 }
 0x178   : > { %v1245_v44 = vpack.c.bf16 %v811_v40, %v810_v38  ;;  %v1285_v45 = vpack.c.bf16 %v827_v41, %v826_v39  ;;  %v1371_v46 = vpop.f32.mrb[12].mxu0  ;;  %v1387_v47 = vpop.f32.mrb[12].mxu1 }
 0x179   : > { %1306 = vst [vmem:[%s1957_s20 + $0x28] sm:$0xff] %v1250_v42   ;;  %1314 = vst [vmem:[%s1957_s20 + $0x68] sm:$0xff] %v1290_v43   ;;  %v784_v48 = vadd.f32 %v1371_v46, %v1945_v24  ;;  %v800_v49 = vadd.f32 %v1387_v47, %v1945_v24  ;;  %v585_v50 = vpop.f32.mrb[13].mxu0  ;;  %v649_v51 = vpop.f32.mrb[13].mxu1 }
 0x17a   : > { %1305 = vst [vmem:[%s1957_s20 + $0x20] sm:$0xff] %v1245_v44   ;;  %1313 = vst [vmem:[%s1957_s20 + $0x60] sm:$0xff] %v1285_v45   ;;  %v782_v52 = vadd.f32 %v1945_v24, %v585_v50  ;;  %v798_v53 = vadd.f32 %v1945_v24, %v649_v51  ;;  %v1372_v54 = vpop.f32.mrb[14].mxu0  ;;  %v1388_v55 = vpop.f32.mrb[14].mxu1 }
 0x17b   : > { %v785_v56 = vadd.f32 %v1372_v54, %v1945_v24  ;;  %v801_v57 = vadd.f32 %v1388_v55, %v1945_v24  ;;  %v588_v58 = vpop.f32.mrb[15].mxu0  ;;  %v652_v59 = vpop.f32.mrb[15].mxu1  ;;  %v816_v62 = vmax.f32 %v784_v48, 0.0  ;;  %v832_v63 = vmax.f32 %v800_v49, 0.0 }
 0x17c   : > { %v783_v60 = vadd.f32 %v1945_v24, %v588_v58  ;;  %v799_v61 = vadd.f32 %v1945_v24, %v652_v59  ;;  %v814_v2 = vmax.f32 %v782_v52, 0.0  ;;  %v830_v3 = vmax.f32 %v798_v53, 0.0 }
 0x17d   : > { %v817_v0 = vmax.f32 %v785_v56, 0.0  ;;  %v833_v1 = vmax.f32 %v801_v57, 0.0 }
 0x17e   : > { %v815_v4 = vmax.f32 %v783_v60, 0.0  ;;  %v831_v5 = vmax.f32 %v799_v61, 0.0 }
 0x17f   : > { %v1260_v6 = vpack.c.bf16 %v817_v0, %v816_v62  ;;  %v1300_v7 = vpack.c.bf16 %v833_v1, %v832_v63 }
 0x180   : > { %v1255_v24 = vpack.c.bf16 %v815_v4, %v814_v2  ;;  %v1295_v8 = vpack.c.bf16 %v831_v5, %v830_v3 }
 0x181   : > { %1308 = vst [vmem:[%s1957_s20 + $0x38] sm:$0xff] %v1260_v6   ;;  %1316 = vst [vmem:[%s1957_s20 + $0x78] sm:$0xff] %v1300_v7  }
 0x182   : > { %1307 = vst [vmem:[%s1957_s20 + $0x30] sm:$0xff] %v1255_v24   ;;  %1315 = vst [vmem:[%s1957_s20 + $0x70] sm:$0xff] %v1295_v8  }
 0x183   : > { %1615 = shalt.err (!%p1612_p11)
}
 0x184   : > { %s1616_s21 = scalar_lea.hbm %s2000_s15, 2048  ;;  %s1620_s5 = scalar_lea.hbm %s2058_s3, 4096 }
 0x185   : > { %p1617_p0 = scmp.ne.s32.totalorder %s2000_s15, %s1616_s21  ;;  %p1621_p6 = scmp.lt.u32.totalorder %s2000_s15, %s2058_s3 }
 0x186   : > { %p1622_p7 = scmp.lt.u32.totalorder %s1620_s5, %s1616_s21  ;;  %p1624_p8 = scmp.lt.u32.totalorder %s1616_s21, %s2000_s15 }
 0x187   : > { %p1618_p4 = pnand %p1617_p0, %p2073_p12 }
 0x188   : > { %p1623_p2 = por %p1622_p7, %p1621_p6 }
 0x189   : > { %p1619_p13 = pneg %p1618_p4 }
 0x18a   : > { %p1625_p1 = por %p1624_p8, %p1623_p2 }
 0x18c   : > { %p1626_p10 = pnand %p1625_p1, %p1619_p13 }
 0x18e   : > { %1629 = shalt.err (!%p1626_p10)
}
 0x18f   : > { %s1696_s20 = smov 64   ;;  %s1697_s22 = smov 4  }
 0x190   : > { %1415 = dma.vmem_to_hbm [thread:$0]  (%p2073_p12), %s2002_s24, 2048, %s2000_s15, %s995_s26, %s1696_s20, %s1696_s20, %s1697_s22  }
 0x191 PF: > { %s1023_s11 = sand.u32 1, %s1668_s12   ;;  %p2074_p3 = scmp.ne.s32.totalorder %s2066_s23, 0 }
 0x192   : > { %p2075_p5 = scmp.ge.s32.totalorder %s1688_s17, 2  ;;  %s1024_s18 = scalar_lea.sflag [#allocation5], %s1023_s11 }
 0x194   : > { %p1429_p9 = pnand %p2075_p5, %p2074_p3 }
 0x196   : > { %1663 = dma.done.wait (!%p1429_p9), %s1024_s18, 2048  }
 0x197   : > { %1665 = vsyncadd (!%p1429_p9), %s1024_s18, 4294965248  ;;  %s20_s17 = sadd.s32 1, %s1688_s17   ;;  %s2076_s12 = smov %s1672_s13 }
 0x198   : > { %p17_p11 = scmp.ge.s32.totalorder %s20_s17, 4   ;;  %s2077_s13 = smov %s1676_s14 }
 0x199   : > { %s2078_s14 = smov %s1864_s6  ;;  %s2079_s15 = smov %s1684_s16 }
 0x19a   : > { %s2080_s16 = smov %s2082_s25  ;;  %19 = sbr.rel (!%p17_p11) target bundleno = 7 (0x7), region = 94 }
 0x1a1   :  { %1029 = vsyncpa [#allocation4], 1 }
 0x1a2   :  { %1031 = vsyncpa [#allocation4 + $0x1], 1 }
 0x1a3   :  { %1032 = vsyncpa [#allocation7], 1 }
 0x1a4   :  { %1033 = vsyncpa [#allocation5], 1 }
 0x1a5   :  { %1035 = vsyncpa [#allocation5 + $0x1], 1 }

</bundles_post_ra>
